<compile_context>
chip_gen: v7x
topology: tpu7x:2x2x1
jax: 0.10.0
libtpu: 0.0.40
codegen_flags: <defaults>
</compile_context>

<pallas_src>
import jax
import jax.numpy as jnp
from jax.experimental import pallas as pl
from jax.experimental.pallas import tpu as pltpu

LRELU_SLOPE = 0.1
_HALO_BLK = 128            # halo block on the lane axis (>= max taps - 1 = 40)
_MAX_T_TILE = 2048
_VMEM_BUDGET = 40 << 20    # per-step working-set target
_VMEM_CAP = 48 << 20       # scoped-VMEM request cap (fits v7x 64 MiB physical)


def get_padding(kernel_size: int, dilation: int = 1) -> int:
    return (kernel_size - 1) * dilation // 2


def _round_up(x: int, m: int) -> int:
    return ((x + m - 1) // m) * m


# ---------------------------------------------------------------------------
# Pallas kernels
# ---------------------------------------------------------------------------
def _make_folded_kernel(slope):
    """Taps already folded into the contraction on the host: one dot per tile."""
    def kernel(x_ref, w_ref, b_ref, o_ref):
        # x_ref: (Rp, T_tile), w_ref: (Cout_g, Rp), b_ref: (Cout_g, 1) f32
        acc = jnp.dot(w_ref[...], x_ref[...], preferred_element_type=jnp.float32)
        acc = acc + b_ref[...]
        if slope is not None:
            acc = jnp.where(acc >= 0, acc, slope * acc)
        o_ref[...] = acc.astype(o_ref.dtype)
    return kernel


def _make_halo_kernel(taps, t_tile, slope):
    """Taps folded in-kernel into the MXU contraction (single dot per tile)."""
    def kernel(xc_ref, xh_ref, w_ref, b_ref, o_ref):
        # xc_ref: (Rp, T_tile) current tile, xh_ref: (Rp, 128) halo,
        # w_ref : (Cout_g, taps*Rp), b_ref: (Cout_g, 1) f32,
        # o_ref : (Cout_g, T_tile) (lane-dense: T on the 128-lane axis).
        x_full = jnp.concatenate([xc_ref[...], xh_ref[...]], axis=-1)
        x_stack = jnp.concatenate(
            [x_full[:, j:j + t_tile] for j in range(taps)], axis=0)
        acc = jnp.dot(w_ref[...], x_stack, preferred_element_type=jnp.float32)
        acc = acc + b_ref[...]
        if slope is not None:
            acc = jnp.where(acc >= 0, acc, slope * acc)
        o_ref[...] = acc.astype(o_ref.dtype)
    return kernel


# ---------------------------------------------------------------------------
# VMEM sizing / time-tile selection
# ---------------------------------------------------------------------------
def _vmem_need(tt, rp, k2, cout_g, isz, osz, fold_on_host):
    hb = 0 if fold_on_host else _HALO_BLK
    need = 0
    need += 2 * rp * tt * isz                 # input tile, double buffered
    need += 2 * rp * hb * isz                 # halo block, double buffered
    need += 2 * cout_g * k2 * rp * isz        # weights, double buffered
    need += 2 * cout_g * 128 * 4              # bias (lane-padded), double buffered
    need += 2 * cout_g * tt * osz             # output tile, double buffered
    need += rp * (tt + hb) * isz              # x_full temporary
    if not fold_on_host:
        need += k2 * rp * tt * isz            # stacked-tap temporary
    need += 2 * cout_g * tt * 4               # f32 acc + epilogue temporaries
    return need


def _pick_t_tile(tout, rp, k2, cout_g, isz, osz, fold_on_host):
    t_cap = _round_up(max(tout, 1), _HALO_BLK)
    best = _HALO_BLK
    for tt in sorted({_HALO_BLK, 256, 512, 1024, _MAX_T_TILE, t_cap}):
        if tt > t_cap or tt > _MAX_T_TILE:
            continue
        if _vmem_need(tt, rp, k2, cout_g, isz, osz, fold_on_host) <= _VMEM_BUDGET:
            best = tt
    return best


# ---------------------------------------------------------------------------
# Grouped 1D conv (+bias, +leaky-ReLU) with PyTorch Conv1d semantics
# ---------------------------------------------------------------------------
def conv1d_nct(x, w, b, *, stride, padding, groups, lrelu_slope=None,
               compute_dtype=jnp.bfloat16):
    """x: (N, Cin, T), w: (Cout, Cin//groups, K) torch layout, b: (Cout,)|None.

    Returns (N, Cout, Tout) in `compute_dtype` (f32 if compute_dtype=f32)."""
    N, Cin, T = x.shape
    Cout, Cin_g, K = w.shape
    G, s = groups, stride
    Cout_g = Cout // G
    assert Cin_g * G == Cin and Cout_g * G == Cout

    Tp = T + 2 * padding
    Tout = (Tp - K) // s + 1
    assert Tout >= 1
    K2 = -(-K // s)                   # taps after space-to-depth
    R = s * Cin_g                     # per-tap contraction width
    fold_on_host = R < 16             # tiny contraction -> full tap fold on host

    out_dtype = compute_dtype
    isz = jnp.dtype(compute_dtype).itemsize
    osz = jnp.dtype(out_dtype).itemsize

    if b is None:
        b = jnp.zeros((Cout,), jnp.float32)
    bt = b.astype(jnp.float32).reshape(G, Cout_g, 1)

    def space_to_depth(xpad, tz):
        # z[n, g, p*Cin_g + c, t] = xpad[n, g*Cin_g + c, t*s + p]
        if s == 1:                                   # identity permutation
            return xpad.reshape(N, G, Cin_g, tz)
        zz = xpad.reshape(N, G, Cin_g, tz, s).transpose(0, 1, 4, 2, 3)
        return zz.reshape(N, G, R, tz)

    # weight (Cout, Cin_g, K) -> (G, Cout_g, K2, R); tap j holds kernel k=j*s+p
    wk = jnp.pad(w, ((0, 0), (0, 0), (0, K2 * s - K)))
    wt = wk.reshape(G, Cout_g, Cin_g, K2, s).transpose(0, 1, 3, 4, 2)
    wt = wt.reshape(G, Cout_g, K2, R)

    if fold_on_host:
        # ---- full tap fold on the host (partial im2col of a tiny signal) ----
        Rf = K2 * R
        Rp = _round_up(Rf, 16)
        T_tile = _pick_t_tile(Tout, Rp, 1, Cout_g, isz, osz, True)
        NT = pl.cdiv(Tout, T_tile)
        ToutP = NT * T_tile

        Lz = (ToutP + K2 - 1) * s
        xp = jnp.pad(x, ((0, 0), (0, 0), (padding, padding + (Lz - Tp))))
        z = space_to_depth(xp, ToutP + K2 - 1)
        z = jnp.concatenate([z[:, :, :, j:j + ToutP] for j in range(K2)], axis=2)
        if Rp != Rf:
            z = jnp.pad(z, ((0, 0), (0, 0), (0, Rp - Rf), (0, 0)))
        z = z.astype(compute_dtype)

        wt = wt.reshape(G, Cout_g, Rf)
        if Rp != Rf:
            wt = jnp.pad(wt, ((0, 0), (0, 0), (0, Rp - Rf)))
        wt = wt.astype(compute_dtype)

        kernel = _make_folded_kernel(lrelu_slope)
        in_specs = [
            pl.BlockSpec((None, None, Rp, T_tile), lambda n, g, t: (n, g, 0, t)),
            pl.BlockSpec((None, Cout_g, Rp), lambda n, g, t: (g, 0, 0)),
            pl.BlockSpec((None, Cout_g, 1), lambda n, g, t: (g, 0, 0)),
        ]
        operands = (z, wt, bt)
        k2_eff, contraction = 1, Rp
    else:
        # ---- taps folded in-kernel; time tiling with a 128-column halo ------
        Rp = _round_up(R, 16)
        T_tile = _pick_t_tile(Tout, Rp, K2, Cout_g, isz, osz, False)
        NT = pl.cdiv(Tout, T_tile)
        ToutP = NT * T_tile
        HB = _HALO_BLK
        assert (K2 - 1) <= HB and T_tile % HB == 0
        TzP = ToutP + HB

        xp = jnp.pad(x, ((0, 0), (0, 0), (padding, padding + (TzP * s - Tp))))
        z = space_to_depth(xp, TzP)
        if Rp != R:
            z = jnp.pad(z, ((0, 0), (0, 0), (0, Rp - R), (0, 0)))
        z = z.astype(compute_dtype)

        # per-tap R padded to Rp, taps flattened into the contraction
        if Rp != R:
            wt = jnp.pad(wt, ((0, 0), (0, 0), (0, 0), (0, Rp - R)))
        wt = wt.reshape(G, Cout_g, K2 * Rp).astype(compute_dtype)

        mult = T_tile // HB
        kernel = _make_halo_kernel(K2, T_tile, lrelu_slope)
        in_specs = [
            # current time tile of the space-to-depth input
            pl.BlockSpec((None, None, Rp, T_tile), lambda n, g, t: (n, g, 0, t)),
            # 128-column halo (next block on the lane axis)
            pl.BlockSpec((None, None, Rp, HB),
                         lambda n, g, t, m=mult: (n, g, 0, (t + 1) * m)),
            # per-group folded weights (resident across the time-tile axis)
            pl.BlockSpec((None, Cout_g, K2 * Rp), lambda n, g, t: (g, 0, 0)),
            # per-group bias
            pl.BlockSpec((None, Cout_g, 1), lambda n, g, t: (g, 0, 0)),
        ]
        operands = (z, z, wt, bt)
        k2_eff, contraction = K2, K2 * Rp

    need = _vmem_need(T_tile, Rp, k2_eff, Cout_g, isz, osz, fold_on_host)
    vmem_limit = int(min(need + (10 << 20), _VMEM_CAP))

    cost = pl.CostEstimate(
        flops=int(2 * N * G * Cout_g * ToutP * contraction),
        transcendentals=0,
        bytes_accessed=int(z.size * isz + N * wt.size * isz
                           + N * G * Cout_g * ToutP * osz),
    )

    out = pl.pallas_call(
        kernel,
        out_shape=jax.ShapeDtypeStruct((N, G, Cout_g, ToutP), out_dtype),
        grid=(N, G, NT),
        in_specs=in_specs,
        out_specs=pl.BlockSpec((None, None, Cout_g, T_tile),
                               lambda n, g, t: (n, g, 0, t)),
        compiler_params=pltpu.CompilerParams(
            dimension_semantics=("parallel", "parallel", "arbitrary"),
            vmem_limit_bytes=vmem_limit,
        ),
        cost_estimate=cost,
    )(*operands)

    # (N, G, Cout_g, ToutP) is exactly NCT after merging (G, Cout_g).
    return out.reshape(N, Cout, ToutP)[:, :, :Tout]


# ---------------------------------------------------------------------------
# Tiny heads kept in plain JAX (not worth an MXU/Pallas launch)
# ---------------------------------------------------------------------------
def _conv1d_post_jax(x, w, b, padding):
    """Cout==1, stride-1 head conv (K<=3) in plain VPU JAX (f32)."""
    x = x.astype(jnp.float32)
    N, C, T = x.shape
    Cout, Cin, K = w.shape
    xp = jnp.pad(x, ((0, 0), (0, 0), (padding, padding)))
    Tout = T + 2 * padding - K + 1
    out = jnp.zeros((N, Cout, Tout), jnp.float32)
    for k in range(K):
        out = out + jnp.einsum('oc,nct->not', w[:, :, k], xp[:, :, k:k + Tout])
    return out + b.reshape(1, Cout, 1)


def avg_pool1d_4_2_2(y):
    """AvgPool1d(4, 2, padding=2), count_include_pad=True, in plain JAX."""
    N, C, T = y.shape
    xp = jnp.pad(y, ((0, 0), (0, 0), (2, 2)))
    Tout = T // 2 + 1
    last = 2 * (Tout - 1) + 1
    return sum(xp[:, :, k:k + last:2] for k in range(4)) * 0.25


# ---------------------------------------------------------------------------
# Parameter init (deterministic, synthetic; weight_norm folded into weights)
# ---------------------------------------------------------------------------
def init_conv(key, cout, cin_g, k):
    kw, kb = jax.random.split(key)
    fan_in = cin_g * k
    w = jax.random.normal(kw, (cout, cin_g, k), jnp.float32) / jnp.sqrt(fan_in)
    b = jax.random.normal(kb, (cout,), jnp.float32) * 0.01
    return (w, b)


MPD_PERIODS = [2, 3, 5, 7, 11]
MPD_STRIDES = [3, 3, 3, 3, 1]
MPD_CHANNELS = [(1, 32), (32, 128), (128, 512), (512, 1024), (1024, 1024)]

# (cin, cout, K, stride, groups, padding) for DiscriminatorS
MSD_SPECS = [
    (1, 128, 15, 1, 1, 7),
    (128, 128, 41, 2, 4, 20),
    (128, 256, 41, 2, 16, 20),
    (256, 512, 41, 4, 16, 20),
    (512, 1024, 41, 4, 16, 20),
    (1024, 1024, 41, 1, 16, 20),
    (1024, 1024, 5, 1, 1, 2),
]


def init_discriminator_p(key):
    keys = jax.random.split(key, len(MPD_CHANNELS) + 1)
    convs = [init_conv(k, co, ci, 5) for k, (ci, co) in zip(keys[:-1], MPD_CHANNELS)]
    conv_post = init_conv(keys[-1], 1, 1024, 3)
    return {'convs': convs, 'conv_post': conv_post}


def init_discriminator_s(key):
    keys = jax.random.split(key, len(MSD_SPECS) + 1)
    convs = [init_conv(k, co, ci // g, ks)
             for k, (ci, co, ks, s, g, p) in zip(keys[:-1], MSD_SPECS)]
    conv_post = init_conv(keys[-1], 1, 1024, 3)
    return {'convs': convs, 'conv_post': conv_post}


# ---------------------------------------------------------------------------
# Sub-discriminator forwards
# ---------------------------------------------------------------------------
def discriminator_p(params, y, period, compute_dtype):
    B, C, T = y.shape
    if T % period != 0:
        n_pad = period - T % period
        y = jnp.pad(y, ((0, 0), (0, 0), (0, n_pad)), mode='reflect')
        T = T + n_pad
    H, W = T // period, period
    x4 = y.reshape(B, C, H, W)                                   # NCHW
    x = x4.transpose(0, 3, 1, 2).reshape(B * W, C, H)            # fold W -> NCT
    fmap = []
    for (w, b), s in zip(params['convs'], MPD_STRIDES):
        x = conv1d_nct(x, w, b, stride=s, padding=get_padding(5, 1), groups=1,
                       lrelu_slope=LRELU_SLOPE, compute_dtype=compute_dtype)
        Cc, Hc = x.shape[1], x.shape[2]
        fmap.append(x.reshape(B, W, Cc, Hc).transpose(0, 2, 3, 1))   # back to NCHW
    w, b = params['conv_post']
    x = _conv1d_post_jax(x, w, b, padding=1)
    Cc, Hc = x.shape[1], x.shape[2]
    xt = x.reshape(B, W, Cc, Hc).transpose(0, 2, 3, 1)               # (B,1,Hc,W)
    fmap.append(xt)
    return xt.reshape(B, -1), fmap


def discriminator_s(params, y, compute_dtype):
    fmap = []
    x = y                                                            # NCT
    for (w, b), (ci, co, ks, s, g, p) in zip(params['convs'], MSD_SPECS):
        x = conv1d_nct(x, w, b, stride=s, padding=p, groups=g,
                       lrelu_slope=LRELU_SLOPE, compute_dtype=compute_dtype)
        fmap.append(x)
    w, b = params['conv_post']
    x = _conv1d_post_jax(x, w, b, padding=1)
    fmap.append(x)
    return x.reshape(x.shape[0], -1), fmap


# ---------------------------------------------------------------------------
# Discriminators (mpd + msd enabled) forward
# ---------------------------------------------------------------------------
def discriminators_forward(params, y, compute_dtype=jnp.bfloat16):
    # NOTE: with compute_dtype=bf16 the inter-layer activations (and thus the
    # returned fmaps) are bf16; pass jnp.float32 for strict PyTorch parity.
    y_ds, fmaps = {}, {}
    if 'mpd' in params:
        yd_l, fm_l = [], []
        for period, pp in zip(MPD_PERIODS, params['mpd']):
            yd, fm = discriminator_p(pp, y, period, compute_dtype)
            yd_l.append(yd)
            fm_l.extend(fm)
        y_ds['mpd'], fmaps['mpd'] = yd_l, fm_l
    if 'msd' in params:
        yd_l, fm_l = [], []
        yy = y
        for i, sp in enumerate(params['msd']):
            if i != 0:
                yy = avg_pool1d_4_2_2(yy)
            yd, fm = discriminator_s(sp, yy, compute_dtype)
            yd_l.append(yd)
            fm_l.extend(fm)
        y_ds['msd'], fmaps['msd'] = yd_l, fm_l
    return y_ds, fmaps


# ---------------------------------------------------------------------------
# Correctness checks of the Pallas conv against lax.conv
# ---------------------------------------------------------------------------
def _reference_conv_lrelu(x, w, b, stride, padding, groups):
    out = jax.lax.conv_general_dilated(
        x, w, window_strides=(stride,), padding=[(padding, padding)],
        dimension_numbers=('NCH', 'OIH', 'NCH'), feature_group_count=groups,
        precision=jax.lax.Precision.HIGHEST)
    out = out + b[None, :, None]
    return jnp.where(out >= 0, out, LRELU_SLOPE * out)


def _check_conv(key):
    # (Cin, Cout, K, stride, groups, pad, T) -- covers host-fold, in-kernel
    # fold, stride-1 fast path, grouped convs, and multi-tile halo cases.
    configs = [
        (1, 32, 15, 1, 1, 7, 300),        # MSD L1: R=1 -> host tap fold, s=1
        (1, 32, 5, 3, 1, 2, 200),         # MPD L1: R=3 -> host tap fold, s=3
        (32, 64, 41, 2, 4, 20, 1400),     # in-kernel fold, grouped, strided
        (32, 64, 41, 2, 4, 20, 5000),     # multi time-tile + halo across tiles
        (64, 64, 41, 1, 4, 20, 620),      # stride 1, 41 taps folded in kernel
        (128, 256, 41, 2, 16, 20, 300),   # 16 groups, Cout_g=16
        (16, 8, 5, 1, 1, 2, 50),          # tiny-T path
    ]
    for i, (ci, co, k, s, g, p, t) in enumerate(configs):
        k1, k2, k3 = jax.random.split(jax.random.fold_in(key, i), 3)
        x = jax.random.normal(k1, (2, ci, t), jnp.float32)
        w = jax.random.normal(k2, (co, ci // g, k), jnp.float32) / jnp.sqrt(ci // g * k)
        b = jax.random.normal(k3, (co,), jnp.float32) * 0.1
        ref = _reference_conv_lrelu(x, w, b, s, p, g)

        out32 = conv1d_nct(x, w, b, stride=s, padding=p, groups=g,
                           lrelu_slope=LRELU_SLOPE, compute_dtype=jnp.float32)
        assert out32.shape == ref.shape, (out32.shape, ref.shape)
        assert jnp.allclose(out32, ref, atol=2e-3, rtol=2e-3), f"f32 mismatch cfg {i}"

        out16 = conv1d_nct(x, w, b, stride=s, padding=p, groups=g,
                           lrelu_slope=LRELU_SLOPE, compute_dtype=jnp.bfloat16)
        assert jnp.allclose(out16.astype(jnp.float32), ref,
                            atol=0.12, rtol=0.12), f"bf16 mismatch cfg {i}"


if __name__ == "__main__":
    key = jax.random.PRNGKey(0)
    k_in, k_mpd, k_msd, k_chk = jax.random.split(key, 4)

    _check_conv(k_chk)

    B, T = 2, 32
    y = jax.random.normal(k_in, (B, 1, T), jnp.float32)          # torch NCT input

    params = {
        'mpd': [init_discriminator_p(k)
                for k in jax.random.split(k_mpd, len(MPD_PERIODS))],
        'msd': [init_discriminator_s(k) for k in jax.random.split(k_msd, 3)],
    }

    # bf16 MXU operands + bf16 inter-layer activations (perf feedback); use
    # compute_dtype=jnp.float32 for strict parity with the f32 PyTorch reference.
    y_ds, fmaps = discriminators_forward(params, y, compute_dtype=jnp.bfloat16)

    leaves = jax.tree_util.tree_leaves((y_ds, fmaps))
    for leaf in leaves:
        jax.block_until_ready(leaf)
    assert all(bool(jnp.all(jnp.isfinite(l.astype(jnp.float32)))) for l in leaves)
    assert len(y_ds['mpd']) == 5 and len(fmaps['mpd']) == 30
    assert len(y_ds['msd']) == 3 and len(fmaps['msd']) == 24

    print("KERNEL_OK")
</pallas_src>

<mosaic_0001>
module attributes {stable_mosaic.version = 11 : i64} {
  func.func @kernel(%arg0: i32, %arg1: i32, %arg2: i32, %arg3: memref<1x1x16x384xf32, #tpu.memory_space<vmem>>, %arg4: memref<1x32x16xf32, #tpu.memory_space<vmem>>, %arg5: memref<1x32x1xf32, #tpu.memory_space<vmem>>, %arg6: memref<1x1x32x384xf32, #tpu.memory_space<vmem>>) attributes {dimension_semantics = [#tpu.dimension_semantics<parallel>, #tpu.dimension_semantics<parallel>, #tpu.dimension_semantics<arbitrary>], iteration_bounds = array<i64: 2, 1, 1>, scalar_prefetch = 0 : i64, scratch_operands = 0 : i64, tpu.core_type = #tpu.core_type<tc>, window_params = [{transform_indices = @transform_0, window_bounds = array<i64: 1, 1, 16, 384>}, {transform_indices = @transform_1, window_bounds = array<i64: 1, 32, 16>}, {transform_indices = @transform_2, window_bounds = array<i64: 1, 32, 1>}, {transform_indices = @transform_3, window_bounds = array<i64: 1, 1, 32, 384>}]} {
    %c0 = arith.constant 0 : index
    %c0_0 = arith.constant 0 : index
    %c0_1 = arith.constant 0 : index
    %0 = vector.load %arg4[%c0, %c0_0, %c0_1] : memref<1x32x16xf32, #tpu.memory_space<vmem>>, vector<1x32x16xf32>
    %1 = vector.shape_cast %0 : vector<1x32x16xf32> to vector<32x16xf32>
    %c0_2 = arith.constant 0 : index
    %c0_3 = arith.constant 0 : index
    %c0_4 = arith.constant 0 : index
    %c0_5 = arith.constant 0 : index
    %2 = vector.load %arg3[%c0_2, %c0_3, %c0_4, %c0_5] : memref<1x1x16x384xf32, #tpu.memory_space<vmem>>, vector<1x1x16x384xf32>
    %3 = vector.shape_cast %2 : vector<1x1x16x384xf32> to vector<16x384xf32>
    %cst = arith.constant dense<0.000000e+00> : vector<32x384xf32>
    %4 = tpu.matmul %1, %3, %cst {dimension_numbers = #tpu.dot_dimension_numbers<[1], [0], [0], [1], [0, 0, 1, 1], [], []>} : vector<32x16xf32>, vector<16x384xf32>, vector<32x384xf32> -> vector<32x384xf32>
    %c0_6 = arith.constant 0 : index
    %c0_7 = arith.constant 0 : index
    %c0_8 = arith.constant 0 : index
    %5 = vector.load %arg5[%c0_6, %c0_7, %c0_8] : memref<1x32x1xf32, #tpu.memory_space<vmem>>, vector<1x32x1xf32>
    %6 = vector.shape_cast %5 : vector<1x32x1xf32> to vector<32x1xf32>
    %7 = vector.broadcast %6 : vector<32x1xf32> to vector<32x384xf32>
    %8 = arith.addf %4, %7 : vector<32x384xf32>
    %cst_9 = arith.constant 0.000000e+00 : f32
    %9 = vector.broadcast %cst_9 : f32 to vector<32x384xf32>
    %10 = arith.cmpf oge, %8, %9 : vector<32x384xf32>
    %cst_10 = arith.constant 1.000000e-01 : f32
    %11 = vector.broadcast %cst_10 : f32 to vector<32x384xf32>
    %12 = arith.mulf %11, %8 : vector<32x384xf32>
    %13 = arith.select %10, %8, %12 : vector<32x384xi1>, vector<32x384xf32>
    %c0_11 = arith.constant 0 : index
    %c0_12 = arith.constant 0 : index
    %c0_13 = arith.constant 0 : index
    %c0_14 = arith.constant 0 : index
    %14 = vector.load %arg6[%c0_11, %c0_12, %c0_13, %c0_14] : memref<1x1x32x384xf32, #tpu.memory_space<vmem>>, vector<1x1x32x384xf32>
    %15 = vector.shape_cast %14 : vector<1x1x32x384xf32> to vector<32x384xf32>
    %16 = vector.shape_cast %13 : vector<32x384xf32> to vector<1x1x32x384xf32>
    tpu.vector_store %arg6[%c0_11, %c0_12, %c0_13, %c0_14], %16 {strides = array<i32>} : memref<1x1x32x384xf32, #tpu.memory_space<vmem>>, vector<1x1x32x384xf32>,
    return
  }
  func.func @transform_0(%arg0: i32, %arg1: i32, %arg2: i32) -> (i32, i32, i32, i32) {
    %c0_i32 = arith.constant 0 : i32
    %c0_i32_0 = arith.constant 0 : i32
    return %arg0, %arg1, %c0_i32, %arg2 : i32, i32, i32, i32
  }
  func.func @transform_1(%arg0: i32, %arg1: i32, %arg2: i32) -> (i32, i32, i32) {
    %c0_i32 = arith.constant 0 : i32
    %c0_i32_0 = arith.constant 0 : i32
    %c0_i32_1 = arith.constant 0 : i32
    return %arg1, %c0_i32, %c0_i32_0 : i32, i32, i32
  }
  func.func @transform_2(%arg0: i32, %arg1: i32, %arg2: i32) -> (i32, i32, i32) {
    %c0_i32 = arith.constant 0 : i32
    %c0_i32_0 = arith.constant 0 : i32
    %c0_i32_1 = arith.constant 0 : i32
    return %arg1, %c0_i32, %c0_i32_0 : i32, i32, i32
  }
  func.func @transform_3(%arg0: i32, %arg1: i32, %arg2: i32) -> (i32, i32, i32, i32) {
    %c0_i32 = arith.constant 0 : i32
    %c0_i32_0 = arith.constant 0 : i32
    return %arg0, %arg1, %c0_i32, %arg2 : i32, i32, i32, i32
  }
}

</mosaic_0001>

<bundles_post_ra>
// kernel: tpu_custom_call.1
= control target key start
LH: loop header
LB: loop body
LE: loop exit
PB: predicated region body
PF: predicated region fallthrough
CT: control target
= control target key end

     0   :  { %8 = vsyncpa [#allocation3], 0  ;;  %s1163_s0 = inlined_call_operand.hbm [shape: f32[2,1,16,384], index: 0, kind: input, shape index: {}]   ;;  %s1164_s1 = inlined_call_operand.vmem [shape: f32[1,32,16], index: 1, kind: input, shape index: {}]   ;;  %s1165_s2 = inlined_call_operand.vmem [shape: f32[1,32,1], index: 2, kind: input, shape index: {}]   ;;  %s1166_s3 = inlined_call_operand.hbm [shape: f32[2,1,32,384], index: 3, kind: output, shape index: {}]  }
   0x1   :  { %10 = vsyncpa [#allocation3 + $0x1], 0 }
   0x2   :  { %11 = vsyncpa [#allocation4], 0 }
   0x3   :  { %13 = vsyncpa [#allocation4 + $0x1], 0  ;;  %s935_s12 = smov 0   ;;  %s937_s13 = smov 0  }
   0x4   :  { %s939_s14 = smov 0   ;;  %s941_s15 = smov 0  }
   0x5   :  { %s943_s16 = smov 0   ;;  %s945_s17 = smov 0  }
   0x6 LB: > { %s673_s18 = sadd.s32 4294967295, %s905_s17   ;;  %s674_s19 = sadd.s32 4294967294, %s905_s17   ;;  %s905_s17 = sphi %s945_s17, %s19_s17   ;;  %s901_s16 = sphi %s943_s16, %s1181_s16   ;;  %s897_s15 = sphi %s941_s15, %s1180_s15   ;;  %s893_s14 = sphi %s939_s14, %s1179_s14   ;;  %s889_s13 = sphi %s937_s13, %s1178_s13   ;;  %s885_s12 = sphi %s935_s12, %s1177_s12  }
   0x7   : > { %s38_s20 = sadd.s32 1, %s901_s16  ;;  %s49_s21 = sadd.s32 1, %s893_s14 }
   0x8   : > { %p40_p0 = scmp.ge.s32.totalorder %s38_s20, 2  ;;  %p56_p1 = scmp.ne.s32.totalorder %s893_s14, %s889_s13 }
   0x9   : > { %p57_p2 = scmp.eq.s32.totalorder %s905_s17, 0  ;;  %p62_p3 = scmp.ne.s32.totalorder %s889_s13, %s885_s12 }
   0xa   : > { %s1183_s20 = smov (%p40_p0, %s38_s20), 0  ;;  %p63_p5 = scmp.eq.s32.totalorder %s673_s18, 0 }
   0xb   : > { %p976_p4 = por %p57_p2, %p56_p1  ;;  %s42_s23 = ssub.s32 %s901_s16, %s1183_s20 }
   0xc   : > { %p142_p6 = scmp.eq.s32.totalorder %s673_s18, 1  ;;  %p47_p7 = scmp.eq.s32.totalorder %s42_s23, 0 }
   0xd   : > { %p982_p8 = por %p63_p5, %p62_p3  ;;  %p148_p10 = scmp.eq.s32.totalorder %s674_s19, 1 }
   0xe   : > { %p986_p9 = por %p142_p6, %p56_p1  ;;  %p735_p13 = scmp.lt.s32.totalorder %s905_s17, 2 }
   0xf   : > { %s991_s26 = scalar_select %p47_p7, %s893_s14, %s49_s21  }
  0x10   : > { %s1170_s25 = scalar_select %p986_p9, 1, 0 }
  0x11   : > { %p993_p11 = por %p148_p10, %p62_p3  ;;  %s184_s28 = sand.u32 1, %s893_s14  }
  0x12   : > { %s718_s29 = smul.u32 48, %s184_s28  ;;  %p1003_p0 = pnand %p735_p13, %p976_p4 }
  0x13   : > { %s1171_s27 = scalar_select %p993_p11, 1, 0 }
  0x14   : > { %s719_s30 = smul.u32 768, %s901_s16  ;;  %s188_s8 = scalar_lea.vmem [#allocation2], %s718_s29 }
  0x15   : > { %s199_s9 = sshll.u32 %s188_s8, 4  ;;  %s1015_s10 = scalar_lea.sflag [#allocation3], %s184_s28  ;;  %s1012_s9 = int_to_ptr.vmem [resolvable:$true] %s199_s9 }
  0x16   : > { %s1010_s7 = scalar_lea.hbm %s1163_s0, %s719_s30  ;;  %p795_p3 = pneg %p1003_p0 }
  0x17   : > { %s793_s11 = scalar_lea.hbm %s1010_s7, 768  ;;  %s798_s21 = scalar_lea.hbm %s1163_s0, 1536 }
  0x18   : > { %p794_p2 = scmp.ne.s32.totalorder %s1010_s7, %s793_s11  ;;  %p799_p6 = scmp.lt.u32.totalorder %s1010_s7, %s1163_s0 }
  0x19   : > { %p800_p7 = scmp.lt.u32.totalorder %s798_s21, %s793_s11  ;;  %p802_p13 = scmp.lt.u32.totalorder %s793_s11, %s1010_s7 }
  0x1a   : > { %p796_p4 = pnand %p795_p3, %p794_p2 }
  0x1b   : > { %p801_p10 = por %p800_p7, %p799_p6 }
  0x1c   : > { %p797_p5 = pneg %p796_p4 }
  0x1d   : > { %p803_p12 = por %p802_p13, %p801_p10 }
  0x1f   : > { %p804_p1 = pnand %p803_p12, %p797_p5 }
  0x21   : > { %807 = shalt.err (!%p804_p1)
}
  0x22   : > { %s808_s28 = scalar_lea.vmem %s1012_s9, 768  ;;  %s907_s29 = smov [#allocation2]  }
  0x23   : > { %p809_p2 = scmp.ne.s32.totalorder %s1012_s9, %s808_s28  ;;  %s813_s30 = sshll.u32 %s907_s29, 4  ;;  %s814_s30 = int_to_ptr.vmem [resolvable:$false] %s813_s30 }
  0x24   : > { %s815_s5 = scalar_lea.vmem %s814_s30, 1536  ;;  %p816_p9 = scmp.lt.s32.totalorder %s1012_s9, %s814_s30 }
  0x25   : > { %p811_p4 = pnand %p809_p2, %p795_p3  ;;  %p817_p6 = scmp.lt.s32.totalorder %s815_s5, %s808_s28 }
  0x27   : > { %p812_p11 = pneg %p811_p4  ;;  %p818_p7 = por %p817_p6, %p816_p9 }
  0x29   : > { %p819_p10 = pnand %p818_p7, %p812_p11 }
  0x2b   : > { %822 = shalt.err (!%p819_p10)
}
  0x2c   : > { %s908_s6 = smov 384   ;;  %s909_s8 = smov 24  }
  0x2d   : > { %730 = dma.hbm_to_vmem [thread:$0]  (!%p1003_p0), %s1010_s7, 768, %s1012_s9, %s1015_s10, %s908_s6, %s908_s6, %s909_s8  }
  0x2e   : > { %p207_p12 = scmp.lt.s32.totalorder %s905_s17, 3  ;;  %p1173_p1 = scmp.ge.s32.totalorder %s905_s17, 1 }
  0x30   : > { %p208_p3 = pnand %p1173_p1, %p207_p12 }
  0x31   : > { %s1047_s11 = sand.u32 (!%p208_p3), 1, %s889_s13  }
  0x32   : > { %211 = sbr.rel (%p208_p3) target bundleno = 308 (0x134), region = 32  ;;  %s214_s19 = scalar_lea.sflag (!%p208_p3), [#allocation3], %s1047_s11 }
  0x33   : > { %s720_s18 = smul.u32 (!%p208_p3), 48, %s1047_s11 }
  0x35   : > { %s217_s21 = scalar_lea.vmem (!%p208_p3), [#allocation2], %s720_s18 }
  0x39   : > { %876 = dma.done.wait (%p982_p8), %s214_s19, 768  }
  0x3a   : > { %878 = vsyncadd (%p982_p8), %s214_s19, 4294966528  ;;  %v910_v0 = vmov 0.0   ;;  %v911_v1 = vmov 0   ;;  %v267_v2 = vld [vmem:[%s217_s21 + $0x8] sm:$0xff]  ;;  %v270_v3 = vld [vmem:[%s217_s21 + $0x20] sm:$0xff]  ;;  %vm296_vm0 = vcmask 130048  }
  0x3b   : > { %373 = vmatprep.mubr.f32.mxu0 %v910_v0  ;;  %391 = vmatprep.mubr.f32.mxu1 %v910_v0  ;;  %v266_v4 = vld [vmem:[%s217_s21] sm:$0xff]  ;;  %v708_v5 = vpack.c.bf16 %v270_v3, %v267_v2  ;;  %v269_v6 = vld [vmem:[%s217_s21 + $0x18] sm:$0xff]  ;;  %v268_v8 = vld [vmem:[%s217_s21 + $0x10] sm:$0xff]  ;;  %s721_s4 = smul.u32 96, %s1047_s11  ;;  %s532_s23 = scalar_lea.sflag [#allocation4], %s1047_s11 }
  0x3c   : > { %792 = vset.pattern.permute.xlu1 %v911_v1  ;;  %791 = vset.pattern.permute.xlu0 %v911_v1  ;;  %v710_v7 = vpack.c.bf16 %v269_v6, %v266_v4  ;;  %v271_v9 = vld [vmem:[%s217_s21 + $0x28] sm:$0xff]  ;;  %v274_v11 = vld [vmem:[%s1165_s2 + $0x10] sm:$0xff]  ;;  %v262_v12 = vld [vmem:[%s1164_s1] sm:$0xff]  ;;  %s722_s7 = smul.u32 1536, %s897_s15  ;;  %p1174_p9 = scmp.ne.s32.totalorder %s1170_s25, 0 }
  0x3d   : > { %709 = vmatprep.subr.bf16.mxu0 %v708_v5  ;;  %716 = vmatprep.subr.bf16.mxu1 %v708_v5  ;;  %v712_v10 = vpack.c.bf16 %v271_v9, %v268_v8  ;;  %v265_v13 = vld [vmem:[%s1164_s1 + $0x18] sm:$0xff]  ;;  %v272_v14 = vld [vmem:[%s1165_s2] sm:$0xff]  ;;  %v273_v16 = vld [vmem:[%s1165_s2 + $0x8] sm:$0xff]  ;;  %s1090_s24 = scalar_lea.vmem [#allocation5], %s721_s4  ;;  %s912_s29 = smov [#allocation5]  }
  0x3e   : > { %711 = vmatpush1.bf16.msra.mxu0 %v710_v7  ;;  %717 = vmatpush1.bf16.msra.mxu1 %v710_v7  ;;  %v275_v15 = vld [vmem:[%s1165_s2 + $0x18] sm:$0xff]  ;;  %v263_v17 = vld [vmem:[%s1164_s1 + $0x8] sm:$0xff]  ;;  %v264_v18 = vld [vmem:[%s1164_s1 + $0x10] sm:$0xff]  ;;  %s549_s9 = sshll.u32 %s1090_s24, 4  ;;  %s1108_s22 = scalar_lea.hbm %s1166_s3, %s722_s7  ;;  %s1110_s9 = int_to_ptr.vmem [resolvable:$true] %s549_s9 }
  0x3f   : > { %713 = vmatprep.subr.bf16.mxu1 %v712_v10  ;;  %288 = vperm.xlu1 %792, %v274_v11   ;;  %s823_s28 = scalar_lea.vmem %s1110_s9, 1536  ;;  %s827_s30 = sshll.u32 %s912_s29, 4  ;;  %s828_s30 = int_to_ptr.vmem [resolvable:$false] %s827_s30 }
  0x40   : > { %278 = vperm.xlu0 %791, %v272_v14   ;;  %p824_p8 = scmp.ne.s32.totalorder %s1110_s9, %s823_s28  ;;  %s829_s5 = scalar_lea.vmem %s828_s30, 3072 }
  0x41   : > { %681 = vmatmul.mubr.msk.f32.vlgmr.msra.gmra.mrb[0].mxu0 %vm296_vm0, %v262_v12  ;;  %684 = vmatmul.mubr.msk.f32.vlgmr.msra.gmra.mrb[0].mxu1 %vm296_vm0, %v265_v13  ;;  %p830_p5 = scmp.lt.s32.totalorder %s1110_s9, %s828_s30  ;;  %p831_p13 = scmp.lt.s32.totalorder %s829_s5, %s823_s28 }
  0x42   : > { %715 = vmatpush3.bf16.msra.mxu1 %v712_v10  ;;  %379 = vmatprep.mubr.f32.mxu0 %v910_v0  ;;  %p825_p11 = pnand %p824_p8, %p1174_p9 }
  0x43   : > { %702 = vmatprep.mubr.msk.f32.mxu1 %vm296_vm0, %v262_v12  ;;  %293 = vperm.xlu1 %792, %v275_v15   ;;  %p832_p2 = por %p831_p13, %p830_p5 }
  0x44   : > { %283 = vperm.xlu0 %791, %v273_v16   ;;  %p826_p0 = pneg %p825_p11 }
  0x45   : > { %682 = vmatmul.mubr.msk.f32.gmra.mrb[2].mxu0 %vm296_vm0, %v263_v17  ;;  %703 = vmatmul.mubr.msk.f32.vlgmr.msra.gmra.mrb[2].mxu1 %vm296_vm0, %v263_v17 }
  0x46   : > { %385 = vmatprep.mubr.f32.mxu0 %v910_v0  ;;  %705 = vmatprep.mubr.msk.f32.mxu1 %vm296_vm0, %v264_v18  ;;  %p833_p4 = pnand %p832_p2, %p826_p0 }
  0x49   : > { %683 = vmatmul.mubr.msk.f32.gmra.mrb[4].mxu0 %vm296_vm0, %v264_v18  ;;  %706 = vmatmul.mubr.msk.f32.gmra.mrb[4].mxu1 %vm296_vm0, %v265_v13 }
  0xbe   : > { %v1087_v19 = vpop.permute.xlu1 %288 }
  0xbf   : > { %v279_v20 = vpop.permute.xlu0 %278 }
  0xc2   : > { %v294_v21 = vpop.permute.xlu1 %293 }
  0xc3   : > { %v284_v32 = vpop.permute.xlu0 %283 }
 0x114   : > { %v375_v22 = vpop.f32.mrb[0].mxu0  ;;  %v393_v23 = vpop.f32.mrb[0].mxu1 }
 0x115   : > { %v376_v24 = vadd.f32 %v375_v22, %v279_v20  ;;  %v394_v25 = vadd.f32 %v393_v23, %v294_v21  ;;  %v377_v26 = vpop.f32.mrb[1].mxu0  ;;  %v395_v27 = vpop.f32.mrb[1].mxu1 }
 0x116   : > { %v378_v28 = vadd.f32 %v377_v26, %v279_v20  ;;  %v396_v29 = vadd.f32 %v395_v27, %v294_v21 }
 0x117   : > { %vm483_vm1 = vcmp.ge.f32.partialorder %v376_v24, 0.0  ;;  %v495_v30 = vmul.f32 0.1, %v376_v24  ;;  %vm492_vm2 = vcmp.ge.f32.partialorder %v394_v25, 0.0  ;;  %v504_v31 = vmul.f32 0.1, %v394_v25 }
 0x118   : > { %vm484_vm3 = vcmp.ge.f32.partialorder %v378_v28, 0.0  ;;  %v496_v33 = vmul.f32 0.1, %v378_v28  ;;  %vm493_vm4 = vcmp.ge.f32.partialorder %v396_v29, 0.0  ;;  %v505_v34 = vmul.f32 0.1, %v396_v29 }
 0x119   : > { %v507_v35 = vsel %vm483_vm1, %v376_v24, %v495_v30  ;;  %v516_v36 = vsel %vm492_vm2, %v394_v25, %v504_v31  ;;  %v381_v37 = vpop.f32.mrb[2].mxu0  ;;  %v704_v38 = vpop.f32.mrb[2].mxu1 }
 0x11a   : > { %519 = vst [vmem:[%s1090_s24] sm:$0xff] %v507_v35  ;;  %528 = vst [vmem:[%s1090_s24 + $0x48] sm:$0xff] %v516_v36  ;;  %v508_v39 = vsel %vm484_vm3, %v378_v28, %v496_v33  ;;  %v517_v40 = vsel %vm493_vm4, %v396_v29, %v505_v34  ;;  %v382_v41 = vadd.f32 %v381_v37, %v284_v32  ;;  %v383_v43 = vpop.f32.mrb[3].mxu0  ;;  %v464_v44 = vpop.f32.mrb[3].mxu1 }
 0x11b   : > { %v470_v42 = vadd.f32 %v704_v38, %v284_v32  ;;  %520 = vst [vmem:[%s1090_s24 + $0x8] sm:$0xff] %v508_v39  ;;  %529 = vst [vmem:[%s1090_s24 + $0x50] sm:$0xff] %v517_v40  ;;  %v384_v45 = vadd.f32 %v383_v43, %v284_v32  ;;  %v465_v46 = vadd.f32 %v464_v44, %v279_v20 }
 0x11c   : > { %vm486_vm5 = vcmp.ge.f32.partialorder %v382_v41, 0.0  ;;  %v498_v47 = vmul.f32 0.1, %v382_v41  ;;  %v387_v53 = vpop.f32.mrb[4].mxu0  ;;  %v707_v54 = vpop.f32.mrb[4].mxu1 }
 0x11d   : > { %vm488_vm6 = vcmp.ge.f32.partialorder %v470_v42, 0.0  ;;  %v500_v48 = vmul.f32 0.1, %v470_v42  ;;  %vm487_vm7 = vcmp.ge.f32.partialorder %v384_v45, 0.0  ;;  %v499_v49 = vmul.f32 0.1, %v384_v45 }
 0x11e   : > { %vm485_vm8 = vcmp.ge.f32.partialorder %v465_v46, 0.0  ;;  %v497_v50 = vmul.f32 0.1, %v465_v46  ;;  %v510_v51 = vsel %vm486_vm5, %v382_v41, %v498_v47  ;;  %v388_v57 = vadd.f32 %v387_v53, %v1087_v19  ;;  %v389_v59 = vpop.f32.mrb[5].mxu0  ;;  %v474_v60 = vpop.f32.mrb[5].mxu1 }
 0x11f   : > { %v512_v52 = vsel %vm488_vm6, %v470_v42, %v500_v48  ;;  %522 = vst [vmem:[%s1090_s24 + $0x18] sm:$0xff] %v510_v51  ;;  %v511_v55 = vsel %vm487_vm7, %v384_v45, %v499_v49  ;;  %v480_v58 = vadd.f32 %v707_v54, %v294_v21  ;;  %v390_v61 = vadd.f32 %v389_v59, %v1087_v19 }
 0x120   : > { %524 = vst [vmem:[%s1090_s24 + $0x28] sm:$0xff] %v512_v52  ;;  %v509_v56 = vsel %vm485_vm8, %v465_v46, %v497_v50  ;;  %523 = vst [vmem:[%s1090_s24 + $0x20] sm:$0xff] %v511_v55  ;;  %v475_v62 = vadd.f32 %v474_v60, %v1087_v19  ;;  %vm489_vm9 = vcmp.ge.f32.partialorder %v388_v57, 0.0  ;;  %v501_v63 = vmul.f32 0.1, %v388_v57 }
 0x121   : > { %521 = vst [vmem:[%s1090_s24 + $0x10] sm:$0xff] %v509_v56  ;;  %vm494_vm10 = vcmp.ge.f32.partialorder %v480_v58, 0.0  ;;  %v506_v0 = vmul.f32 0.1, %v480_v58  ;;  %vm490_vm11 = vcmp.ge.f32.partialorder %v390_v61, 0.0 }
 0x122   : > { %v502_v1 = vmul.f32 0.1, %v390_v61  ;;  %vm491_vm12 = vcmp.ge.f32.partialorder %v475_v62, 0.0  ;;  %v503_v2 = vmul.f32 0.1, %v475_v62  ;;  %v513_v3 = vsel %vm489_vm9, %v388_v57, %v501_v63 }
 0x123   : > { %v518_v4 = vsel %vm494_vm10, %v480_v58, %v506_v0  ;;  %525 = vst [vmem:[%s1090_s24 + $0x30] sm:$0xff] %v513_v3 }
 0x124   : > { %530 = vst [vmem:[%s1090_s24 + $0x58] sm:$0xff] %v518_v4  ;;  %v514_v5 = vsel %vm490_vm11, %v390_v61, %v502_v1  ;;  %v515_v6 = vsel %vm491_vm12, %v475_v62, %v503_v2 }
 0x125   : > { %526 = vst [vmem:[%s1090_s24 + $0x38] sm:$0xff] %v514_v5  ;;  %527 = vst [vmem:[%s1090_s24 + $0x40] sm:$0xff] %v515_v6 }
 0x126   : > { %836 = shalt.err (!%p833_p4)
}
 0x127   : > { %s837_s6 = scalar_lea.hbm %s1108_s22, 1536  ;;  %s841_s19 = scalar_lea.hbm %s1166_s3, 3072 }
 0x128   : > { %p838_p6 = scmp.ne.s32.totalorder %s1108_s22, %s837_s6  ;;  %p842_p12 = scmp.lt.u32.totalorder %s1108_s22, %s1166_s3 }
 0x129   : > { %p843_p1 = scmp.lt.u32.totalorder %s841_s19, %s837_s6  ;;  %p845_p8 = scmp.lt.u32.totalorder %s837_s6, %s1108_s22 }
 0x12a   : > { %p839_p7 = pnand %p838_p6, %p1174_p9 }
 0x12b   : > { %p844_p3 = por %p843_p1, %p842_p12 }
 0x12c   : > { %p840_p10 = pneg %p839_p7 }
 0x12d   : > { %p846_p11 = por %p845_p8, %p844_p3 }
 0x12f   : > { %p847_p0 = pnand %p846_p11, %p840_p10 }
 0x131   : > { %850 = shalt.err (!%p847_p0)
}
 0x132   : > { %s913_s24 = smov 384   ;;  %s914_s7 = smov 24  }
 0x133   : > { %725 = dma.vmem_to_hbm [thread:$0]  (%p1174_p9), %s1110_s9, 1536, %s1108_s22, %s532_s23, %s913_s24, %s913_s24, %s914_s7  }
 0x134 PF: > { %s564_s15 = sand.u32 1, %s885_s12   ;;  %p1175_p5 = scmp.ne.s32.totalorder %s1171_s27, 0 }
 0x135   : > { %p1176_p13 = scmp.ge.s32.totalorder %s905_s17, 2  ;;  %s565_s10 = scalar_lea.sflag [#allocation4], %s564_s15 }
 0x137   : > { %p732_p2 = pnand %p1176_p13, %p1175_p5 }
 0x139   : > { %880 = dma.done.wait (!%p732_p2), %s565_s10, 1536  }
 0x13a   : > { %882 = vsyncadd (!%p732_p2), %s565_s10, 4294965760  ;;  %s19_s17 = sadd.s32 1, %s905_s17   ;;  %s1177_s12 = smov %s889_s13 }
 0x13b   : > { %p16_p4 = scmp.ge.s32.totalorder %s19_s17, 4   ;;  %s1178_s13 = smov %s893_s14 }
 0x13c   : > { %s1179_s14 = smov %s991_s26  ;;  %s1180_s15 = smov %s901_s16 }
 0x13d   : > { %s1181_s16 = smov %s1183_s20  ;;  %18 = sbr.rel (!%p16_p4) target bundleno = 6 (0x6), region = 83 }
 0x144   :  { %570 = vsyncpa [#allocation3], 1 }
 0x145   :  { %572 = vsyncpa [#allocation3 + $0x1], 1 }
 0x146   :  { %573 = vsyncpa [#allocation4], 1 }
 0x147   :  { %575 = vsyncpa [#allocation4 + $0x1], 1 }

</bundles_post_ra>
